<compile_context>
chip_gen: v7x
topology: tpu7x:2x2x1
jax: 0.10.0
libtpu: 0.0.40
codegen_flags: <defaults>
</compile_context>

<pallas_src>
import functools

import jax
import jax.numpy as jnp
from jax.experimental import pallas as pl
from jax.experimental.pallas import tpu as pltpu


def _stats_kernel(x_ref, sum_ref, ssq_ref):
    """Accumulate per-channel sum and sum-of-squares.

    x_ref:   (CT, TM)  (N-axis squeezed)
    sum_ref: (CT, 1)   resident accumulator (same block across n/hw steps)
    ssq_ref: (CT, 1)
    """
    n_idx = pl.program_id(1)
    hw_idx = pl.program_id(2)

    @pl.when(jnp.logical_and(n_idx == 0, hw_idx == 0))
    def _():
        sum_ref[...] = jnp.zeros_like(sum_ref)
        ssq_ref[...] = jnp.zeros_like(ssq_ref)

    x = x_ref[...].astype(jnp.float32)
    sum_ref[...] += jnp.sum(x, axis=-1, keepdims=True)
    ssq_ref[...] += jnp.sum(x * x, axis=-1, keepdims=True)


def _normalize_kernel(x_ref, scale_ref, shift_ref, o_ref):
    """y = x * scale + shift  (scale/shift fold mean, rsqrt(var+eps), gamma, beta)."""
    x = x_ref[...].astype(jnp.float32)
    y = x * scale_ref[...] + shift_ref[...]
    o_ref[...] = y.astype(o_ref.dtype)


def _pick_tile(dim, target, align):
    """Largest divisor of `dim` that is a multiple of `align` and <= target.

    Falls back to the full dim (always a legal block extent) when no aligned
    divisor exists.
    """
    if dim % align != 0:
        return dim
    best = align
    t = align
    limit = min(dim, target)
    while t <= limit:
        if dim % t == 0:
            best = t
        t += align
    return best


def batchnorm_forward(x_nchw, gamma, beta, eps=1e-5, momentum=0.1,
                      r_mean=0.0, r_var=0.0):
    """Training-mode BatchNorm forward matching the PyTorch module's forward.

    x_nchw: (N, C, H, W); gamma, beta: (1, C, 1, 1).
    Returns (y, new_r_mean, new_r_var).  The module initializes its running
    stats to 0, so the defaults r_mean=0, r_var=0 reproduce its first step.
    """
    N, C, H, W = x_nchw.shape
    HW = H * W
    M = N * HW

    # Free, contiguous reshape — no transpose, no extra HBM traffic.
    x = x_nchw.reshape(N, C, HW)

    CT = _pick_tile(C, target=64, align=8)      # channel tile (sublane axis)
    TM = _pick_tile(HW, target=2048, align=128)  # spatial tile (lane axis)
    grid_c = C // CT
    grid_hw = HW // TM

    cparams_stats = pltpu.CompilerParams(
        dimension_semantics=("parallel", "arbitrary", "arbitrary"),
        vmem_limit_bytes=32 * 1024 * 1024,
    )
    cparams_norm = pltpu.CompilerParams(
        dimension_semantics=("parallel", "parallel", "parallel"),
        vmem_limit_bytes=32 * 1024 * 1024,
    )

    # ---- Pass 1: per-channel sum / sumsq (one HBM read of x). ----
    sums, ssqs = pl.pallas_call(
        _stats_kernel,
        out_shape=(
            jax.ShapeDtypeStruct((C, 1), jnp.float32),
            jax.ShapeDtypeStruct((C, 1), jnp.float32),
        ),
        grid=(grid_c, N, grid_hw),
        in_specs=[
            pl.BlockSpec((None, CT, TM), lambda c, n, hw: (n, c, hw)),
        ],
        out_specs=(
            pl.BlockSpec((CT, 1), lambda c, n, hw: (c, 0)),
            pl.BlockSpec((CT, 1), lambda c, n, hw: (c, 0)),
        ),
        compiler_params=cparams_stats,
    )(x)

    # ---- Tiny (C,1) math in plain JAX: fold stats + affine into scale/shift. ----
    inv_m = 1.0 / float(M)
    mean = sums * inv_m                                      # (C, 1)
    var = jnp.maximum(ssqs * inv_m - mean * mean, 0.0)       # biased (unbiased=False)
    inv_std = jax.lax.rsqrt(var + jnp.float32(eps))
    gamma_c1 = gamma.reshape(C, 1).astype(jnp.float32)
    beta_c1 = beta.reshape(C, 1).astype(jnp.float32)
    scale = gamma_c1 * inv_std                               # (C, 1)
    shift = beta_c1 - mean * scale                           # (C, 1)

    # ---- Pass 2: normalize (one HBM read + one write of x). ----
    # TODO(synk): for bf16 inputs a bf16 multiply-add path (v6e/v7x) would halve
    # vreg/VMEM footprint; f32 compute kept here for numerical parity.
    y = pl.pallas_call(
        _normalize_kernel,
        out_shape=jax.ShapeDtypeStruct((N, C, HW), x_nchw.dtype),
        grid=(grid_c, N, grid_hw),
        in_specs=[
            pl.BlockSpec((None, CT, TM), lambda c, n, hw: (n, c, hw)),
            pl.BlockSpec((CT, 1), lambda c, n, hw: (c, 0)),
            pl.BlockSpec((CT, 1), lambda c, n, hw: (c, 0)),
        ],
        out_specs=pl.BlockSpec((None, CT, TM), lambda c, n, hw: (n, c, hw)),
        compiler_params=cparams_norm,
    )(x, scale, shift)

    y = y.reshape(N, C, H, W)

    # ---- Running-stat bookkeeping (module state), from kernel stats only. ----
    n_f = float(M)
    unbias = n_f / (n_f - 1.0) if n_f > 1.0 else 1.0
    mean4 = mean.reshape(1, C, 1, 1)
    var4 = var.reshape(1, C, 1, 1)
    new_r_mean = momentum * mean4 + (1.0 - momentum) * r_mean
    new_r_var = momentum * unbias * var4 + (1.0 - momentum) * r_var
    return y, new_r_mean, new_r_var


if __name__ == "__main__":
    key = jax.random.PRNGKey(0)
    N, C, H, W = 2, 4, 16, 16
    x = jax.random.normal(key, (N, C, H, W), dtype=jnp.float32)

    # Deterministic parameter init, same as the module: gamma=1, beta=0.
    gamma = jnp.ones((1, C, 1, 1), dtype=jnp.float32)
    beta = jnp.zeros((1, C, 1, 1), dtype=jnp.float32)

    y, r_mean, r_var = batchnorm_forward(x, gamma, beta, eps=1e-5, momentum=0.1)
    y = jax.block_until_ready(y)

    # Pure-JAX reference (same semantics as the PyTorch forward, training mode).
    mean_ref = jnp.mean(x, axis=(0, 2, 3), keepdims=True)
    var_ref = jnp.var(x, axis=(0, 2, 3), keepdims=True)  # biased
    y_ref = (x - mean_ref) / jnp.sqrt(var_ref + 1e-5) * gamma + beta
    assert jnp.allclose(y, y_ref, atol=1e-4, rtol=1e-5), "y mismatch vs reference"

    M = float(N * H * W)
    r_mean_ref = 0.1 * mean_ref
    r_var_ref = 0.1 * (M / (M - 1.0)) * var_ref
    assert jnp.allclose(r_mean, r_mean_ref, atol=1e-5), "running mean mismatch"
    assert jnp.allclose(r_var, r_var_ref, atol=1e-5), "running var mismatch"

    print("KERNEL_OK")
</pallas_src>

<mosaic_0001>
module attributes {stable_mosaic.version = 11 : i64} {
  func.func @_stats_kernel(%arg0: i32, %arg1: i32, %arg2: i32, %arg3: memref<1x4x256xf32, #tpu.memory_space<vmem>>, %arg4: memref<4x1xf32, #tpu.memory_space<vmem>>, %arg5: memref<4x1xf32, #tpu.memory_space<vmem>>) attributes {dimension_semantics = [#tpu.dimension_semantics<parallel>, #tpu.dimension_semantics<arbitrary>, #tpu.dimension_semantics<arbitrary>], iteration_bounds = array<i64: 1, 2, 1>, scalar_prefetch = 0 : i64, scratch_operands = 0 : i64, tpu.core_type = #tpu.core_type<tc>, window_params = [{transform_indices = @transform_0, window_bounds = array<i64: 1, 4, 256>}, {transform_indices = @transform_1, window_bounds = array<i64: 4, 1>}, {transform_indices = @transform_2, window_bounds = array<i64: 4, 1>}]} {
    %c0_i32 = arith.constant 0 : i32
    %0 = arith.cmpi eq, %arg1, %c0_i32 : i32
    %c0_i32_0 = arith.constant 0 : i32
    %1 = arith.cmpi eq, %arg2, %c0_i32_0 : i32
    %2 = arith.andi %0, %1 : i1
    %3 = arith.extui %2 : i1 to i32
    %c0_i32_1 = arith.constant 0 : i32
    %4 = arith.cmpi ne, %3, %c0_i32_1 : i32
    scf.if %4 {
      %cst_13 = arith.constant 0.000000e+00 : f32
      %18 = vector.broadcast %cst_13 : f32 to vector<4x1xf32>
      %c0_14 = arith.constant 0 : index
      %c0_15 = arith.constant 0 : index
      %19 = vector.load %arg4[%c0_14, %c0_15] : memref<4x1xf32, #tpu.memory_space<vmem>>, vector<4x1xf32>
      tpu.vector_store %arg4[%c0_14, %c0_15], %18 {strides = array<i32>} : memref<4x1xf32, #tpu.memory_space<vmem>>, vector<4x1xf32>,
      %cst_16 = arith.constant 0.000000e+00 : f32
      %20 = vector.broadcast %cst_16 : f32 to vector<4x1xf32>
      %c0_17 = arith.constant 0 : index
      %c0_18 = arith.constant 0 : index
      %21 = vector.load %arg5[%c0_17, %c0_18] : memref<4x1xf32, #tpu.memory_space<vmem>>, vector<4x1xf32>
      tpu.vector_store %arg5[%c0_17, %c0_18], %20 {strides = array<i32>} : memref<4x1xf32, #tpu.memory_space<vmem>>, vector<4x1xf32>,
    } else {
    }
    %c0 = arith.constant 0 : index
    %c0_2 = arith.constant 0 : index
    %c0_3 = arith.constant 0 : index
    %5 = vector.load %arg3[%c0, %c0_2, %c0_3] : memref<1x4x256xf32, #tpu.memory_space<vmem>>, vector<1x4x256xf32>
    %6 = vector.shape_cast %5 : vector<1x4x256xf32> to vector<4x256xf32>
    %c0_4 = arith.constant 0 : index
    %c0_5 = arith.constant 0 : index
    %7 = vector.load %arg4[%c0_4, %c0_5] : memref<4x1xf32, #tpu.memory_space<vmem>>, vector<4x1xf32>
    %cst = arith.constant dense<0.000000e+00> : vector<4xf32>
    %8 = vector.multi_reduction <add>, %6, %cst [1] : vector<4x256xf32> to vector<4xf32>
    %9 = vector.shape_cast %8 : vector<4xf32> to vector<4x1xf32>
    %10 = arith.addf %7, %9 : vector<4x1xf32>
    %c0_6 = arith.constant 0 : index
    %c0_7 = arith.constant 0 : index
    %11 = vector.load %arg4[%c0_6, %c0_7] : memref<4x1xf32, #tpu.memory_space<vmem>>, vector<4x1xf32>
    tpu.vector_store %arg4[%c0_6, %c0_7], %10 {strides = array<i32>} : memref<4x1xf32, #tpu.memory_space<vmem>>, vector<4x1xf32>,
    %c0_8 = arith.constant 0 : index
    %c0_9 = arith.constant 0 : index
    %12 = vector.load %arg5[%c0_8, %c0_9] : memref<4x1xf32, #tpu.memory_space<vmem>>, vector<4x1xf32>
    %13 = arith.mulf %6, %6 : vector<4x256xf32>
    %cst_10 = arith.constant dense<0.000000e+00> : vector<4xf32>
    %14 = vector.multi_reduction <add>, %13, %cst_10 [1] : vector<4x256xf32> to vector<4xf32>
    %15 = vector.shape_cast %14 : vector<4xf32> to vector<4x1xf32>
    %16 = arith.addf %12, %15 : vector<4x1xf32>
    %c0_11 = arith.constant 0 : index
    %c0_12 = arith.constant 0 : index
    %17 = vector.load %arg5[%c0_11, %c0_12] : memref<4x1xf32, #tpu.memory_space<vmem>>, vector<4x1xf32>
    tpu.vector_store %arg5[%c0_11, %c0_12], %16 {strides = array<i32>} : memref<4x1xf32, #tpu.memory_space<vmem>>, vector<4x1xf32>,
    return
  }
  func.func @transform_0(%arg0: i32, %arg1: i32, %arg2: i32) -> (i32, i32, i32) {
    %c0_i32 = arith.constant 0 : i32
    return %arg1, %arg0, %arg2 : i32, i32, i32
  }
  func.func @transform_1(%arg0: i32, %arg1: i32, %arg2: i32) -> (i32, i32) {
    %c0_i32 = arith.constant 0 : i32
    %c0_i32_0 = arith.constant 0 : i32
    return %arg0, %c0_i32 : i32, i32
  }
  func.func @transform_2(%arg0: i32, %arg1: i32, %arg2: i32) -> (i32, i32) {
    %c0_i32 = arith.constant 0 : i32
    %c0_i32_0 = arith.constant 0 : i32
    return %arg0, %c0_i32 : i32, i32
  }
}

</mosaic_0001>

<bundles_post_ra>
// kernel: tpu_custom_call.1
= control target key start
LH: loop header
LB: loop body
LE: loop exit
PB: predicated region body
PF: predicated region fallthrough
CT: control target
= control target key end

     0   :  { %8 = vsyncpa [#allocation3], 0  ;;  %s650_s0 = inlined_call_operand.hbm [shape: f32[2,4,256], index: 0, kind: input, shape index: {}]   ;;  %s651_s1 = inlined_call_operand.vmem [shape: f32[4,1], index: 1, kind: output, shape index: {0}]   ;;  %s652_s2 = inlined_call_operand.vmem [shape: f32[4,1], index: 2, kind: output, shape index: {1}]  }
   0x1   :  { %10 = vsyncpa [#allocation3 + $0x1], 0  ;;  %s511_s9 = smov 0   ;;  %s513_s10 = smov 0  }
   0x2   :  { %s515_s11 = smov 0   ;;  %s517_s12 = smov 0  }
   0x3   :  { %s519_s13 = smov 0   ;;  %s521_s14 = smov 0  }
   0x4 LB: > { %s340_s15 = sadd.s32 4294967295, %s492_s14   ;;  %s31_s16 = sadd.s32 1, %s488_s13  ;;  %s492_s14 = sphi %s521_s14, %s16_s14   ;;  %s488_s13 = sphi %s519_s13, %s662_s13   ;;  %s484_s12 = sphi %s517_s12, %s661_s12   ;;  %s480_s11 = sphi %s515_s11, %s660_s11   ;;  %s476_s10 = sphi %s513_s10, %s659_s10   ;;  %s472_s9 = sphi %s511_s9, %s658_s9  }
   0x5   : > { %p33_p0 = scmp.ge.s32.totalorder %s31_s16, 2  ;;  %s46_s17 = sadd.s32 1, %s480_s11 }
   0x6   : > { %p53_p1 = scmp.ne.s32.totalorder %s480_s11, %s476_s10  ;;  %p54_p2 = scmp.eq.s32.totalorder %s492_s14, 0 }
   0x7   : > { %s664_s16 = smov (%p33_p0, %s31_s16), 0  ;;  %p59_p4 = scmp.ne.s32.totalorder %s476_s10, %s472_s9 }
   0x8   : > { %p547_p3 = por %p54_p2, %p53_p1  ;;  %s39_s19 = ssub.s32 %s488_s13, %s664_s16 }
   0x9   : > { %p60_p5 = scmp.eq.s32.totalorder %s340_s15, 0  ;;  %p44_p6 = scmp.eq.s32.totalorder %s39_s19, 0 }
   0xa   : > { %p361_p8 = scmp.lt.s32.totalorder %s492_s14, 2  ;;  %s135_s22 = sand.u32 1, %s480_s11  }
   0xb   : > { %p554_p7 = por %p60_p5, %p59_p4  ;;  %s353_s23 = sshll.u32 %s488_s13, 7 }
   0xc   : > { %s560_s21 = scalar_select %p44_p6, %s480_s11, %s46_s17  }
   0xd   : > { %s343_s24 = sshll.u32 %s135_s22, 3  ;;  %s567_s27 = scalar_lea.hbm %s650_s0, %s353_s23 }
   0xe   : > { %s139_s28 = scalar_lea.vmem [#allocation2], %s343_s24  ;;  %p571_p9 = pnand %p361_p8, %p547_p3 }
   0xf   : > { %s151_s29 = sshll.u32 %s139_s28, 4  ;;  %s136_s3 = scalar_lea.sflag [#allocation3], %s135_s22  ;;  %s575_s29 = int_to_ptr.vmem [resolvable:$true] %s151_s29 }
  0x10   : > { %s412_s4 = scalar_lea.hbm %s567_s27, 128  ;;  %p414_p13 = pneg %p571_p9 }
  0x11   : > { %p413_p12 = scmp.ne.s32.totalorder %s567_s27, %s412_s4  ;;  %s417_s7 = scalar_lea.hbm %s650_s0, 256 }
  0x12   : > { %p418_p2 = scmp.lt.u32.totalorder %s567_s27, %s650_s0  ;;  %p419_p3 = scmp.lt.u32.totalorder %s417_s7, %s412_s4 }
  0x13   : > { %p415_p0 = pnand %p414_p13, %p413_p12  ;;  %p421_p5 = scmp.lt.u32.totalorder %s412_s4, %s567_s27 }
  0x14   : > { %p420_p4 = por %p419_p3, %p418_p2 }
  0x15   : > { %p416_p1 = pneg %p415_p0 }
  0x16   : > { %p422_p6 = por %p421_p5, %p420_p4 }
  0x18   : > { %p423_p8 = pnand %p422_p6, %p416_p1 }
  0x1a   : > { %426 = shalt.err (!%p423_p8)
}
  0x1b   : > { %s427_s15 = scalar_lea.vmem %s575_s29, 128  ;;  %s494_s17 = smov [#allocation2]  }
  0x1c   : > { %p428_p12 = scmp.ne.s32.totalorder %s575_s29, %s427_s15  ;;  %s432_s18 = sshll.u32 %s494_s17, 4  ;;  %s433_s18 = int_to_ptr.vmem [resolvable:$false] %s432_s18 }
  0x1d   : > { %s434_s19 = scalar_lea.vmem %s433_s18, 256  ;;  %p435_p11 = scmp.lt.s32.totalorder %s575_s29, %s433_s18 }
  0x1e   : > { %p430_p0 = pnand %p428_p12, %p414_p13  ;;  %p436_p2 = scmp.lt.s32.totalorder %s434_s19, %s427_s15 }
  0x20   : > { %p431_p10 = pneg %p430_p0  ;;  %p437_p3 = por %p436_p2, %p435_p11 }
  0x22   : > { %p438_p4 = pnand %p437_p3, %p431_p10 }
  0x24   : > { %441 = shalt.err (!%p438_p4)
}
  0x25   : > { %360 = dma.hbm_to_vmem [thread:$0]  (!%p571_p9), %s567_s27, 128, %s575_s29, %s136_s3  }
  0x26   : > { %p656_p1 = scmp.lt.s32.totalorder %s492_s14, 3  ;;  %p657_p5 = scmp.ge.s32.totalorder %s492_s14, 1 }
  0x28   : > { %p157_p13 = pnand %p657_p5, %p656_p1 }
  0x29   : > { %s162_s22 = sand.u32 (!%p157_p13), 1, %s476_s10  }
  0x2a   : > { %160 = sbr.rel (%p157_p13) target bundleno = 214 (0xd6), region = 24  ;;  %s347_s23 = sshll.u32 (!%p157_p13), %s162_s22, 3 }
  0x2b   : > { %s163_s24 = scalar_lea.sflag (!%p157_p13), [#allocation3], %s162_s22  ;;  %s166_s25 = scalar_lea.vmem (!%p157_p13), [#allocation2], %s347_s23 }
  0x31   : > { %467 = dma.done.wait (%p554_p7), %s163_s24, 128  }
  0x32   : > { %469 = vsyncadd (%p554_p7), %s163_s24, 4294967168  ;;  %p199_p10 = scmp.eq.s32.totalorder %s484_s12, 0 }
  0x33   : > { %vm205_vm0 = vcmask (%p199_p10), 3072   ;;  %v495_v0 = vmov (%p199_p10), 0.0  }
  0x34   : > { %204 = sbr.rel (!%p199_p10) target bundleno = 59 (0x3b), region = 32  ;;  %206 = vst.msk [vmem:[%s651_s1] sm:$0xf] (%p199_p10), %vm205_vm0, %v495_v0  ;;  %207 = vst.msk [vmem:[%s652_s2] sm:$0xf] (%p199_p10), %vm205_vm0, %v495_v0 }
  0x3b PF: > { %v208_v1 = vld [vmem:[%s166_s25] sm:$0xff]  ;;  %vm213_vm1 = vcmask 1043456   ;;  %vm220_vm2 = vcmask 3072  }
  0x3c   : > { %v211_v2 = vcombine.high %v208_v1, %v208_v1  ;;  %v214_v3 = vsel %vm213_vm1, %v208_v1, 0.0  ;;  %v223_v4 = vmul.f32 %v208_v1, %v208_v1  ;;  %v209_v11 = vld [vmem:[%s651_s1] sm:$0xf] }
  0x3d   : > { %v222_v14 = vld [vmem:[%s652_s2] sm:$0xf] }
  0x3e   : > { %v215_v5 = vsel %vm213_vm1, %v211_v2, 0.0  ;;  %v225_v6 = vcombine.high %v223_v4, %v223_v4  ;;  %v227_v7 = vsel %vm213_vm1, %v223_v4, 0.0 }
  0x3f   : > { %v216_v8 = vadd.f32 %v215_v5, %v214_v3 }
  0x40   : > { %v228_v9 = vsel %vm213_vm1, %v225_v6, 0.0 }
  0x41   : > { %217 = vadd.xlane.f32.xlu0 %v216_v8  ;;  %v229_v10 = vadd.f32 %v228_v9, %v227_v7 }
  0x45   : > { %230 = vadd.xlane.f32.xlu0 %v229_v10 }
  0xce   : > { %v218_v12 = vpop.xlane.xlu0 %217 }
  0xcf   : > { %v219_v13 = vadd.f32 %v218_v12, %v209_v11 }
  0xd1   : > { %221 = vst.msk [vmem:[%s651_s1] sm:$0xf] %vm220_vm2, %v219_v13 }
  0xd2   : > { %v231_v15 = vpop.xlane.xlu0 %230 }
  0xd3   : > { %v232_v16 = vadd.f32 %v231_v15, %v222_v14 }
  0xd5   : > { %233 = vst.msk [vmem:[%s652_s2] sm:$0xf] %vm220_vm2, %v232_v16 }
  0xd6 PF: > { %s16_s14 = sadd.s32 1, %s492_s14   ;;  %s658_s9 = smov %s476_s10 }
  0xd7   : > { %p13_p7 = scmp.ge.s32.totalorder %s16_s14, 4   ;;  %s659_s10 = smov %s480_s11 }
  0xd8   : > { %s660_s11 = smov %s560_s21  ;;  %s661_s12 = smov %s488_s13 }
  0xd9   : > { %s662_s13 = smov %s664_s16  ;;  %15 = sbr.rel (!%p13_p7) target bundleno = 4 (0x4), region = 80 }
  0xe0   :  { %267 = vsyncpa [#allocation3], 1 }
  0xe1   :  { %269 = vsyncpa [#allocation3 + $0x1], 1 }

</bundles_post_ra>
